<compile_context>
chip_gen: v5e
topology: v5e:2x2
jax: 0.10.0
libtpu: 0.0.40
codegen_flags: <defaults>
</compile_context>

<pallas_src>
import functools

import jax
import jax.numpy as jnp
from jax.experimental import pallas as pl
from jax.experimental.pallas import tpu as pltpu


# ------------------------------- helpers ------------------------------------

def _round_up(n, m):
    return ((n + m - 1) // m) * m


def _gelu(x):
    # TODO(synk): torch.nn.GELU() defaults to the exact erf form; the tanh
    # approximation (guaranteed EUP lowering) is used here and mirrored in the
    # pure-JAX reference.
    c = jnp.float32(0.7978845608028654)  # sqrt(2/pi)
    return 0.5 * x * (1.0 + jnp.tanh(c * (x + 0.044715 * (x * x * x))))


def _layer_norm(t, gamma, beta, inv_d):
    # Padded columns of t are exactly zero, so plain sums over the padded
    # width divided by the *true* D give correct statistics.
    eps = jnp.float32(1e-5)
    mu = jnp.sum(t, axis=-1, keepdims=True) * inv_d
    ex2 = jnp.sum(t * t, axis=-1, keepdims=True) * inv_d
    var = ex2 - mu * mu
    return (t - mu) * jax.lax.rsqrt(var + eps) * gamma + beta


def _write_head(h, head, out_ref, inv_d):
    """Final LayerNorm + Linear(D,1); output written batch-along-lanes."""
    fin_g = head[1:2, :]
    fin_b = head[2:3, :]
    reg_w = head[3:4, :]            # [1, Dp]
    reg_b = head[4:5, 0:1]          # [1, 1]
    hn = _layer_norm(h, fin_g, fin_b, inv_d)            # [TB, Dp]
    # trans_b matmul: [1,Dp] x [TB,Dp]^T -> [1,TB] (batch along lanes).
    row = jax.lax.dot_general(reg_w, hn, (((1,), (1,)), ((), ())),
                              preferred_element_type=jnp.float32) + reg_b
    out_ref[...] = jnp.broadcast_to(row, out_ref.shape).astype(out_ref.dtype)


# ------------------------------- kernels ------------------------------------

def _resmlp_kernel(num_layers, d_true, d_pad, h_pad,
                   x_ref, emb_w_ref, head_ref, w1_ref, w2_ref, vec_ref,
                   out_ref):
    """Fully weight-resident variant.

    Packed operand layout (all zero-padded):
      x_ref     [TB, Fp]        bf16  batch tile of inputs
      emb_w_ref [Fp, Dp]        bf16  embedding weight
      head_ref  [8,  Dp]        f32   rows: 0=emb_b 1=fin_g 2=fin_b 3=reg_w 4=reg_b@[4,0]
      w1_ref    [L, Dp, Hp]     bf16  per-layer expand weights
      w2_ref    [L, Hp, Dp]     bf16  per-layer project weights
      vec_ref   [L, 8, Hp]      f32   rows: 0=ln_g 1=ln_b 2=b1 3=b2
      out_ref   [8, TB]         f32   regressor row broadcast across 8 sublanes
    """
    inv_d = jnp.float32(1.0 / d_true)
    head = head_ref[...]
    emb_b = head[0:1, :]

    # Embedding Linear (bf16 MXU, f32 accumulation; residual stream is f32).
    h = jnp.dot(x_ref[...], emb_w_ref[...],
                preferred_element_type=jnp.float32) + emb_b        # [TB, Dp]

    def block(l, h):
        w1 = w1_ref[l]                                  # [Dp, Hp] bf16
        w2 = w2_ref[l]                                  # [Hp, Dp] bf16
        v = vec_ref[l]                                  # [8, Hp]  f32
        ln_g = v[0:1, :d_pad]
        ln_b = v[1:2, :d_pad]
        b1 = v[2:3, :]
        b2 = v[3:4, :d_pad]
        y = _layer_norm(h, ln_g, ln_b, inv_d)
        y = jnp.dot(y.astype(jnp.bfloat16), w1,
                    preferred_element_type=jnp.float32) + b1
        y = _gelu(y)
        y = jnp.dot(y.astype(jnp.bfloat16), w2,
                    preferred_element_type=jnp.float32) + b2
        # Dropout is identity at inference.
        return h + y

    # Full unroll only while the unrolled body stays small.
    unroll = True if (num_layers <= 8 and d_pad * h_pad <= 512 * 512) else 2
    h = jax.lax.fori_loop(0, num_layers, block, h, unroll=unroll)

    _write_head(h, head, out_ref, inv_d)


def _resmlp_stream_kernel(d_true, d_pad, h_pad,
                          x_ref, emb_w_ref, head_ref, w1_ref, w2_ref, vec_ref,
                          out_ref, h_ref):
    """Layer-streaming variant: grid=(batch_tiles, L); per-layer weight blocks
    are streamed (double-buffered by the pipeline) while the residual h lives
    in a persistent VMEM scratch."""
    inv_d = jnp.float32(1.0 / d_true)
    l = pl.program_id(1)
    head = head_ref[...]

    @pl.when(l == 0)
    def _():
        emb_b = head[0:1, :]
        h_ref[...] = jnp.dot(x_ref[...], emb_w_ref[...],
                             preferred_element_type=jnp.float32) + emb_b

    v = vec_ref[...]                                    # [8, Hp]
    ln_g = v[0:1, :d_pad]
    ln_b = v[1:2, :d_pad]
    b1 = v[2:3, :]
    b2 = v[3:4, :d_pad]

    h = h_ref[...]
    y = _layer_norm(h, ln_g, ln_b, inv_d)
    y = jnp.dot(y.astype(jnp.bfloat16), w1_ref[...],
                preferred_element_type=jnp.float32) + b1
    y = _gelu(y)
    y = jnp.dot(y.astype(jnp.bfloat16), w2_ref[...],
                preferred_element_type=jnp.float32) + b2
    h = h + y                                           # Dropout = identity
    h_ref[...] = h

    @pl.when(l == pl.num_programs(1) - 1)
    def _():
        _write_head(h, head, out_ref, inv_d)


# ---------------------------- host wrapper -----------------------------------

def _vmem_limit_bytes():
    cap = 64 * 1024 * 1024
    try:
        info = pltpu.get_tpu_info()
        cap = int(getattr(info, "vmem_capacity_bytes", cap)) or cap
    except Exception:
        pass
    if cap >= 100 * 1024 * 1024:          # v5e / v6e (128 MiB physical)
        return 112 * 1024 * 1024
    # v7x (64 MiB physical) and smaller: leave headroom for Mosaic scratch.
    return max(cap - 8 * 1024 * 1024, cap // 2)


def _resident_spec(block_shape, index_map):
    """Grid-invariant (weight) input: single-buffer it when supported."""
    try:
        return pl.BlockSpec(block_shape, index_map, pipeline_mode=pl.Buffered(1))
    except Exception:
        return pl.BlockSpec(block_shape, index_map)


def _pick_batch_tile(B):
    if B >= 512:
        tb = 256                              # match the 256-wide MXU (v6e/v7x)
    elif B >= 128:
        tb = 128
    else:
        tb = _round_up(B, 16)                 # bf16 x tile: 16-row aligned
    b_pad = _round_up(B, tb)
    # Prefer >=2 batch tiles so the "parallel" axis can shard across v7x's 2 TCs.
    if b_pad // tb == 1 and b_pad >= 32:
        tb = _round_up(b_pad // 2, 16)
        b_pad = _round_up(B, tb)
    return tb, b_pad


def _pack_params(p, f_pad, d_pad, h_pad):
    """Pad + pack natural-layout params into the kernel's packed layout."""
    f_in, d = p["emb_w"].shape
    h = p["blocks"][0]["w1"].shape[1]

    def pad2(a, r, c):
        return jnp.zeros((r, c), jnp.float32).at[:a.shape[0], :a.shape[1]].set(a)

    emb_w = pad2(p["emb_w"], f_pad, d_pad).astype(jnp.bfloat16)

    head = jnp.zeros((8, d_pad), jnp.float32)
    head = head.at[0, :d].set(p["emb_b"])
    head = head.at[1, :d].set(p["fin_g"])
    head = head.at[2, :d].set(p["fin_b"])
    head = head.at[3, :d].set(p["reg_w"])
    head = head.at[4, 0].set(p["reg_b"])

    w1s, w2s, vecs = [], [], []
    for blk in p["blocks"]:
        w1s.append(pad2(blk["w1"], d_pad, h_pad))
        w2s.append(pad2(blk["w2"], h_pad, d_pad))
        v = jnp.zeros((8, h_pad), jnp.float32)
        v = v.at[0, :d].set(blk["ln_g"])
        v = v.at[1, :d].set(blk["ln_b"])
        v = v.at[2, :h].set(blk["b1"])
        v = v.at[3, :d].set(blk["b2"])
        vecs.append(v)

    w1s = jnp.stack(w1s).astype(jnp.bfloat16)   # [L, Dp, Hp]
    w2s = jnp.stack(w2s).astype(jnp.bfloat16)   # [L, Hp, Dp]
    vecs = jnp.stack(vecs)                      # [L, 8, Hp] f32
    return emb_w, head, w1s, w2s, vecs


def resmlp_forward(x, params, *, force_stream=False):
    B, f_in = x.shape
    d = params["emb_w"].shape[1]
    L = len(params["blocks"])
    assert L >= 1
    h_dim = params["blocks"][0]["w1"].shape[1]

    f_pad = _round_up(f_in, 128)
    d_pad = _round_up(d, 128)
    h_pad = _round_up(h_dim, 128)

    tb, b_pad = _pick_batch_tile(B)
    n_tiles = b_pad // tb

    x_p = jnp.zeros((b_pad, f_pad), jnp.bfloat16).at[:B, :f_in].set(
        x.astype(jnp.bfloat16))
    emb_w, head, w1s, w2s, vecs = _pack_params(params, f_pad, d_pad, h_pad)

    vmem_limit = _vmem_limit_bytes()
    weight_bytes = ((emb_w.size + w1s.size + w2s.size) * 2
                    + (head.size + vecs.size) * 4)
    stream = bool(force_stream) or weight_bytes > int(0.55 * vmem_limit)

    out_shape = jax.ShapeDtypeStruct((n_tiles * 8, tb), jnp.float32)

    if not stream:
        kernel = functools.partial(_resmlp_kernel, L, d, d_pad, h_pad)
        grid = (n_tiles,)
        in_specs = [
            pl.BlockSpec((tb, f_pad), lambda i: (i, 0)),               # x tiled
            _resident_spec((f_pad, d_pad), lambda i: (0, 0)),          # resident
            _resident_spec((8, d_pad), lambda i: (0, 0)),
            _resident_spec((L, d_pad, h_pad), lambda i: (0, 0, 0)),
            _resident_spec((L, h_pad, d_pad), lambda i: (0, 0, 0)),
            _resident_spec((L, 8, h_pad), lambda i: (0, 0, 0)),
        ]
        out_specs = pl.BlockSpec((8, tb), lambda i: (i, 0))
        scratch_shapes = ()
        dim_sem = ("parallel",)
        layer_reads = 1
    else:
        kernel = functools.partial(_resmlp_stream_kernel, d, d_pad, h_pad)
        grid = (n_tiles, L)
        in_specs = [
            pl.BlockSpec((tb, f_pad), lambda i, l: (i, 0)),            # x tiled
            _resident_spec((f_pad, d_pad), lambda i, l: (0, 0)),       # resident
            _resident_spec((8, d_pad), lambda i, l: (0, 0)),
            pl.BlockSpec((None, d_pad, h_pad), lambda i, l: (l, 0, 0)),  # stream
            pl.BlockSpec((None, h_pad, d_pad), lambda i, l: (l, 0, 0)),
            pl.BlockSpec((None, 8, h_pad), lambda i, l: (l, 0, 0)),
        ]
        out_specs = pl.BlockSpec((8, tb), lambda i, l: (i, 0))
        scratch_shapes = [pltpu.VMEM((tb, d_pad), jnp.float32)]        # residual
        dim_sem = ("parallel", "arbitrary")
        layer_reads = n_tiles          # weights re-streamed once per batch tile

    flops = 2 * b_pad * (f_pad * d_pad + L * 2 * d_pad * h_pad + d_pad)
    transcendentals = b_pad * L * h_pad
    bytes_accessed = (x_p.size * 2 + emb_w.size * 2 + head.size * 4
                      + layer_reads * (w1s.size * 2 + w2s.size * 2 + vecs.size * 4)
                      + n_tiles * 8 * tb * 4)

    out = pl.pallas_call(
        kernel,
        out_shape=out_shape,
        grid=grid,
        in_specs=in_specs,
        out_specs=out_specs,
        scratch_shapes=scratch_shapes,
        compiler_params=pltpu.CompilerParams(
            dimension_semantics=dim_sem,
            vmem_limit_bytes=vmem_limit,
        ),
        cost_estimate=pl.CostEstimate(
            flops=flops,
            transcendentals=transcendentals,
            bytes_accessed=bytes_accessed,
        ),
    )(x_p, emb_w, head, w1s, w2s, vecs)

    # Tile i wrote its tb batch values along lanes in sublane 0 (rows 8i..8i+7
    # are identical); assemble and slice back to (B, 1).
    out = out.reshape(n_tiles, 8, tb)[:, 0, :].reshape(b_pad)[:B]
    return out.reshape(B, 1)


# --------------------------- params & reference ------------------------------

def init_params(key, input_features_nb, embedding_dim, num_layers, expansion_factor):
    """Deterministic synthetic parameters in natural (unpadded) layout.
    Linear weights stored as [in_features, out_features]."""
    d = embedding_dim
    h = d * expansion_factor
    keys = iter(jax.random.split(key, 8 + 8 * num_layers))

    def lin(fan_in, fan_out):
        w = jax.random.normal(next(keys), (fan_in, fan_out), jnp.float32) / jnp.sqrt(fan_in)
        b = 0.1 * jax.random.normal(next(keys), (fan_out,), jnp.float32)
        return w, b

    emb_w, emb_b = lin(input_features_nb, d)
    blocks = []
    for _ in range(num_layers):
        w1, b1 = lin(d, h)
        w2, b2 = lin(h, d)
        blocks.append(dict(
            ln_g=1.0 + 0.1 * jax.random.normal(next(keys), (d,), jnp.float32),
            ln_b=0.1 * jax.random.normal(next(keys), (d,), jnp.float32),
            w1=w1, b1=b1, w2=w2, b2=b2))
    reg_w, _ = lin(d, 1)
    return dict(
        emb_w=emb_w, emb_b=emb_b, blocks=blocks,
        fin_g=1.0 + 0.1 * jax.random.normal(next(keys), (d,), jnp.float32),
        fin_b=0.1 * jax.random.normal(next(keys), (d,), jnp.float32),
        reg_w=reg_w[:, 0],
        reg_b=0.1 * jax.random.normal(next(keys), (), jnp.float32),
    )


def reference_forward(x, params):
    """Pure-JAX reference on unpadded params. Matmul operands are rounded to
    bf16 (then multiplied at HIGHEST precision) to mirror the kernel's
    bf16-MXU-inputs / f32-accumulation numerics."""
    hi = jax.lax.Precision.HIGHEST

    def mm(a, w):
        return jnp.dot(a.astype(jnp.bfloat16).astype(jnp.float32),
                       w.astype(jnp.bfloat16).astype(jnp.float32),
                       precision=hi)

    def ln(t, g, b, eps=1e-5):
        mu = jnp.mean(t, axis=-1, keepdims=True)
        var = jnp.mean((t - mu) ** 2, axis=-1, keepdims=True)
        return (t - mu) * jax.lax.rsqrt(var + eps) * g + b

    h = mm(x, params["emb_w"]) + params["emb_b"]
    for blk in params["blocks"]:
        y = ln(h, blk["ln_g"], blk["ln_b"])
        y = mm(y, blk["w1"]) + blk["b1"]
        y = _gelu(y)
        y = mm(y, blk["w2"]) + blk["b2"]
        h = h + y
    hn = ln(h, params["fin_g"], params["fin_b"])
    return jnp.sum(hn * params["reg_w"][None, :], axis=-1, keepdims=True) + params["reg_b"]


# ---------------------------------- main -------------------------------------

if __name__ == "__main__":
    key = jax.random.PRNGKey(0)
    k1, k2, k3, k4 = jax.random.split(key, 4)

    # Test 1: weight-resident path (small model, single batch tile).
    B1, F1, D1, L1, E1 = 8, 16, 32, 2, 2
    x1 = jax.random.normal(k1, (B1, F1), jnp.float32)
    p1 = init_params(k2, F1, D1, L1, E1)
    out1 = jax.block_until_ready(jax.jit(resmlp_forward)(x1, p1))
    ref1 = reference_forward(x1, p1)
    assert out1.shape == (B1, 1), out1.shape
    assert jnp.allclose(out1, ref1, atol=2e-3, rtol=2e-3), (
        out1, ref1, jnp.max(jnp.abs(out1 - ref1)))

    # Test 2: forced layer-streaming path (multi-tile batch, padded rows).
    B2, F2, D2, L2, E2 = 40, 24, 32, 3, 2
    x2 = jax.random.normal(k3, (B2, F2), jnp.float32)
    p2 = init_params(k4, F2, D2, L2, E2)
    fwd_stream = jax.jit(functools.partial(resmlp_forward, force_stream=True))
    out2 = jax.block_until_ready(fwd_stream(x2, p2))
    ref2 = reference_forward(x2, p2)
    assert out2.shape == (B2, 1), out2.shape
    assert jnp.allclose(out2, ref2, atol=2e-3, rtol=2e-3), (
        out2, ref2, jnp.max(jnp.abs(out2 - ref2)))

    print("KERNEL_OK")
</pallas_src>

<mosaic_0001>
module attributes {stable_mosaic.version = 11 : i64} {
  func.func @_resmlp_kernel(%arg0: i32, %arg1: memref<16x128xbf16, #tpu.memory_space<vmem>>, %arg2: memref<128x128xbf16, #tpu.memory_space<vmem>>, %arg3: memref<8x128xf32, #tpu.memory_space<vmem>>, %arg4: memref<2x128x128xbf16, #tpu.memory_space<vmem>>, %arg5: memref<2x128x128xbf16, #tpu.memory_space<vmem>>, %arg6: memref<2x8x128xf32, #tpu.memory_space<vmem>>, %arg7: memref<8x16xf32, #tpu.memory_space<vmem>>) attributes {dimension_semantics = [#tpu.dimension_semantics<parallel>], iteration_bounds = array<i64: 1>, scalar_prefetch = 0 : i64, scratch_operands = 0 : i64, tpu.core_type = #tpu.core_type<tc>, window_params = [{transform_indices = @transform_0, window_bounds = array<i64: 16, 128>}, {pipeline_mode = #tpu.pipeline_mode<synchronous>, transform_indices = @transform_1, window_bounds = array<i64: 128, 128>}, {pipeline_mode = #tpu.pipeline_mode<synchronous>, transform_indices = @transform_2, window_bounds = array<i64: 8, 128>}, {pipeline_mode = #tpu.pipeline_mode<synchronous>, transform_indices = @transform_3, window_bounds = array<i64: 2, 128, 128>}, {pipeline_mode = #tpu.pipeline_mode<synchronous>, transform_indices = @transform_4, window_bounds = array<i64: 2, 128, 128>}, {pipeline_mode = #tpu.pipeline_mode<synchronous>, transform_indices = @transform_5, window_bounds = array<i64: 2, 8, 128>}, {transform_indices = @transform_6, window_bounds = array<i64: 8, 16>}]} {
    %c0 = arith.constant 0 : index
    %c0_0 = arith.constant 0 : index
    %0 = vector.load %arg3[%c0, %c0_0] : memref<8x128xf32, #tpu.memory_space<vmem>>, vector<8x128xf32>
    %1 = vector.extract_strided_slice %0 {offsets = [0, 0], sizes = [1, 128], strides = [1, 1]} : vector<8x128xf32> to vector<1x128xf32>
    %c0_1 = arith.constant 0 : index
    %c0_2 = arith.constant 0 : index
    %2 = vector.load %arg1[%c0_1, %c0_2] : memref<16x128xbf16, #tpu.memory_space<vmem>>, vector<16x128xbf16>
    %c0_3 = arith.constant 0 : index
    %c0_4 = arith.constant 0 : index
    %3 = vector.load %arg2[%c0_3, %c0_4] : memref<128x128xbf16, #tpu.memory_space<vmem>>, vector<128x128xbf16>
    %cst = arith.constant dense<0.000000e+00> : vector<16x128xf32>
    %4 = tpu.matmul %2, %3, %cst {dimension_numbers = #tpu.dot_dimension_numbers<[1], [0], [0], [1], [0, 0, 1, 1], [], []>} : vector<16x128xbf16>, vector<128x128xbf16>, vector<16x128xf32> -> vector<16x128xf32>
    %5 = vector.broadcast %1 : vector<1x128xf32> to vector<16x128xf32>
    %6 = arith.addf %4, %5 : vector<16x128xf32>
    %cst_5 = arith.constant 3.125000e-02 : f32
    %c0_i32 = arith.constant 0 : i32
    %7 = arith.index_cast %c0_i32 : i32 to index
    %c0_6 = arith.constant 0 : index
    %c0_7 = arith.constant 0 : index
    %8 = vector.load %arg4[%7, %c0_6, %c0_7] : memref<2x128x128xbf16, #tpu.memory_space<vmem>>, vector<1x128x128xbf16>
    %9 = vector.shape_cast %8 : vector<1x128x128xbf16> to vector<128x128xbf16>
    %10 = arith.index_cast %c0_i32 : i32 to index
    %c0_8 = arith.constant 0 : index
    %c0_9 = arith.constant 0 : index
    %11 = vector.load %arg5[%10, %c0_8, %c0_9] : memref<2x128x128xbf16, #tpu.memory_space<vmem>>, vector<1x128x128xbf16>
    %12 = vector.shape_cast %11 : vector<1x128x128xbf16> to vector<128x128xbf16>
    %13 = arith.index_cast %c0_i32 : i32 to index
    %c0_10 = arith.constant 0 : index
    %c0_11 = arith.constant 0 : index
    %14 = vector.load %arg6[%13, %c0_10, %c0_11] : memref<2x8x128xf32, #tpu.memory_space<vmem>>, vector<1x8x128xf32>
    %15 = vector.shape_cast %14 : vector<1x8x128xf32> to vector<8x128xf32>
    %16 = vector.extract_strided_slice %15 {offsets = [0, 0], sizes = [1, 128], strides = [1, 1]} : vector<8x128xf32> to vector<1x128xf32>
    %17 = vector.extract_strided_slice %15 {offsets = [1, 0], sizes = [1, 128], strides = [1, 1]} : vector<8x128xf32> to vector<1x128xf32>
    %18 = vector.extract_strided_slice %15 {offsets = [2, 0], sizes = [1, 128], strides = [1, 1]} : vector<8x128xf32> to vector<1x128xf32>
    %19 = vector.extract_strided_slice %15 {offsets = [3, 0], sizes = [1, 128], strides = [1, 1]} : vector<8x128xf32> to vector<1x128xf32>
    %cst_12 = arith.constant dense<0.000000e+00> : vector<16xf32>
    %20 = vector.multi_reduction <add>, %6, %cst_12 [1] : vector<16x128xf32> to vector<16xf32>
    %21 = vector.shape_cast %20 : vector<16xf32> to vector<16x1xf32>
    %22 = vector.broadcast %cst_5 : f32 to vector<16x1xf32>
    %23 = arith.mulf %21, %22 : vector<16x1xf32>
    %24 = arith.mulf %6, %6 : vector<16x128xf32>
    %cst_13 = arith.constant dense<0.000000e+00> : vector<16xf32>
    %25 = vector.multi_reduction <add>, %24, %cst_13 [1] : vector<16x128xf32> to vector<16xf32>
    %26 = vector.shape_cast %25 : vector<16xf32> to vector<16x1xf32>
    %27 = vector.broadcast %cst_5 : f32 to vector<16x1xf32>
    %28 = arith.mulf %26, %27 : vector<16x1xf32>
    %29 = arith.mulf %23, %23 : vector<16x1xf32>
    %30 = arith.subf %28, %29 : vector<16x1xf32>
    %31 = vector.broadcast %23 : vector<16x1xf32> to vector<16x128xf32>
    %32 = arith.subf %6, %31 : vector<16x128xf32>
    %cst_14 = arith.constant 9.99999974E-6 : f32
    %33 = vector.broadcast %cst_14 : f32 to vector<16x1xf32>
    %34 = arith.addf %30, %33 : vector<16x1xf32>
    %35 = math.rsqrt %34 : vector<16x1xf32>
    %36 = vector.broadcast %35 : vector<16x1xf32> to vector<16x128xf32>
    %37 = arith.mulf %32, %36 : vector<16x128xf32>
    %38 = vector.broadcast %16 : vector<1x128xf32> to vector<16x128xf32>
    %39 = arith.mulf %37, %38 : vector<16x128xf32>
    %40 = vector.broadcast %17 : vector<1x128xf32> to vector<16x128xf32>
    %41 = arith.addf %39, %40 : vector<16x128xf32>
    %42 = arith.truncf %41 : vector<16x128xf32> to vector<16x128xbf16>
    %cst_15 = arith.constant dense<0.000000e+00> : vector<16x128xf32>
    %43 = tpu.matmul %42, %9, %cst_15 {dimension_numbers = #tpu.dot_dimension_numbers<[1], [0], [0], [1], [0, 0, 1, 1], [], []>} : vector<16x128xbf16>, vector<128x128xbf16>, vector<16x128xf32> -> vector<16x128xf32>
    %44 = vector.broadcast %18 : vector<1x128xf32> to vector<16x128xf32>
    %45 = arith.addf %43, %44 : vector<16x128xf32>
    %cst_16 = arith.constant 5.000000e-01 : f32
    %46 = vector.broadcast %cst_16 : f32 to vector<16x128xf32>
    %47 = arith.mulf %46, %45 : vector<16x128xf32>
    %48 = arith.mulf %45, %45 : vector<16x128xf32>
    %49 = arith.mulf %48, %45 : vector<16x128xf32>
    %cst_17 = arith.constant 4.471500e-02 : f32
    %50 = vector.broadcast %cst_17 : f32 to vector<16x128xf32>
    %51 = arith.mulf %50, %49 : vector<16x128xf32>
    %52 = arith.addf %45, %51 : vector<16x128xf32>
    %cst_18 = arith.constant 0.797884583 : f32
    %53 = vector.broadcast %cst_18 : f32 to vector<16x128xf32>
    %54 = arith.mulf %53, %52 : vector<16x128xf32>
    %55 = math.tanh %54 : vector<16x128xf32>
    %cst_19 = arith.constant 1.000000e+00 : f32
    %56 = vector.broadcast %cst_19 : f32 to vector<16x128xf32>
    %57 = arith.addf %56, %55 : vector<16x128xf32>
    %58 = arith.mulf %47, %57 : vector<16x128xf32>
    %59 = arith.truncf %58 : vector<16x128xf32> to vector<16x128xbf16>
    %cst_20 = arith.constant dense<0.000000e+00> : vector<16x128xf32>
    %60 = tpu.matmul %59, %12, %cst_20 {dimension_numbers = #tpu.dot_dimension_numbers<[1], [0], [0], [1], [0, 0, 1, 1], [], []>} : vector<16x128xbf16>, vector<128x128xbf16>, vector<16x128xf32> -> vector<16x128xf32>
    %61 = vector.broadcast %19 : vector<1x128xf32> to vector<16x128xf32>
    %62 = arith.addf %60, %61 : vector<16x128xf32>
    %63 = arith.addf %6, %62 : vector<16x128xf32>
    %c1_i32 = arith.constant 1 : i32
    %64 = arith.index_cast %c1_i32 : i32 to index
    %c0_21 = arith.constant 0 : index
    %c0_22 = arith.constant 0 : index
    %65 = vector.load %arg4[%64, %c0_21, %c0_22] : memref<2x128x128xbf16, #tpu.memory_space<vmem>>, vector<1x128x128xbf16>
    %66 = vector.shape_cast %65 : vector<1x128x128xbf16> to vector<128x128xbf16>
    %67 = arith.index_cast %c1_i32 : i32 to index
    %c0_23 = arith.constant 0 : index
    %c0_24 = arith.constant 0 : index
    %68 = vector.load %arg5[%67, %c0_23, %c0_24] : memref<2x128x128xbf16, #tpu.memory_space<vmem>>, vector<1x128x128xbf16>
    %69 = vector.shape_cast %68 : vector<1x128x128xbf16> to vector<128x128xbf16>
    %70 = arith.index_cast %c1_i32 : i32 to index
    %c0_25 = arith.constant 0 : index
    %c0_26 = arith.constant 0 : index
    %71 = vector.load %arg6[%70, %c0_25, %c0_26] : memref<2x8x128xf32, #tpu.memory_space<vmem>>, vector<1x8x128xf32>
    %72 = vector.shape_cast %71 : vector<1x8x128xf32> to vector<8x128xf32>
    %73 = vector.extract_strided_slice %72 {offsets = [0, 0], sizes = [1, 128], strides = [1, 1]} : vector<8x128xf32> to vector<1x128xf32>
    %74 = vector.extract_strided_slice %72 {offsets = [1, 0], sizes = [1, 128], strides = [1, 1]} : vector<8x128xf32> to vector<1x128xf32>
    %75 = vector.extract_strided_slice %72 {offsets = [2, 0], sizes = [1, 128], strides = [1, 1]} : vector<8x128xf32> to vector<1x128xf32>
    %76 = vector.extract_strided_slice %72 {offsets = [3, 0], sizes = [1, 128], strides = [1, 1]} : vector<8x128xf32> to vector<1x128xf32>
    %cst_27 = arith.constant dense<0.000000e+00> : vector<16xf32>
    %77 = vector.multi_reduction <add>, %63, %cst_27 [1] : vector<16x128xf32> to vector<16xf32>
    %78 = vector.shape_cast %77 : vector<16xf32> to vector<16x1xf32>
    %79 = vector.broadcast %cst_5 : f32 to vector<16x1xf32>
    %80 = arith.mulf %78, %79 : vector<16x1xf32>
    %81 = arith.mulf %63, %63 : vector<16x128xf32>
    %cst_28 = arith.constant dense<0.000000e+00> : vector<16xf32>
    %82 = vector.multi_reduction <add>, %81, %cst_28 [1] : vector<16x128xf32> to vector<16xf32>
    %83 = vector.shape_cast %82 : vector<16xf32> to vector<16x1xf32>
    %84 = vector.broadcast %cst_5 : f32 to vector<16x1xf32>
    %85 = arith.mulf %83, %84 : vector<16x1xf32>
    %86 = arith.mulf %80, %80 : vector<16x1xf32>
    %87 = arith.subf %85, %86 : vector<16x1xf32>
    %88 = vector.broadcast %80 : vector<16x1xf32> to vector<16x128xf32>
    %89 = arith.subf %63, %88 : vector<16x128xf32>
    %cst_29 = arith.constant 9.99999974E-6 : f32
    %90 = vector.broadcast %cst_29 : f32 to vector<16x1xf32>
    %91 = arith.addf %87, %90 : vector<16x1xf32>
    %92 = math.rsqrt %91 : vector<16x1xf32>
    %93 = vector.broadcast %92 : vector<16x1xf32> to vector<16x128xf32>
    %94 = arith.mulf %89, %93 : vector<16x128xf32>
    %95 = vector.broadcast %73 : vector<1x128xf32> to vector<16x128xf32>
    %96 = arith.mulf %94, %95 : vector<16x128xf32>
    %97 = vector.broadcast %74 : vector<1x128xf32> to vector<16x128xf32>
    %98 = arith.addf %96, %97 : vector<16x128xf32>
    %99 = arith.truncf %98 : vector<16x128xf32> to vector<16x128xbf16>
    %cst_30 = arith.constant dense<0.000000e+00> : vector<16x128xf32>
    %100 = tpu.matmul %99, %66, %cst_30 {dimension_numbers = #tpu.dot_dimension_numbers<[1], [0], [0], [1], [0, 0, 1, 1], [], []>} : vector<16x128xbf16>, vector<128x128xbf16>, vector<16x128xf32> -> vector<16x128xf32>
    %101 = vector.broadcast %75 : vector<1x128xf32> to vector<16x128xf32>
    %102 = arith.addf %100, %101 : vector<16x128xf32>
    %cst_31 = arith.constant 5.000000e-01 : f32
    %103 = vector.broadcast %cst_31 : f32 to vector<16x128xf32>
    %104 = arith.mulf %103, %102 : vector<16x128xf32>
    %105 = arith.mulf %102, %102 : vector<16x128xf32>
    %106 = arith.mulf %105, %102 : vector<16x128xf32>
    %cst_32 = arith.constant 4.471500e-02 : f32
    %107 = vector.broadcast %cst_32 : f32 to vector<16x128xf32>
    %108 = arith.mulf %107, %106 : vector<16x128xf32>
    %109 = arith.addf %102, %108 : vector<16x128xf32>
    %cst_33 = arith.constant 0.797884583 : f32
    %110 = vector.broadcast %cst_33 : f32 to vector<16x128xf32>
    %111 = arith.mulf %110, %109 : vector<16x128xf32>
    %112 = math.tanh %111 : vector<16x128xf32>
    %cst_34 = arith.constant 1.000000e+00 : f32
    %113 = vector.broadcast %cst_34 : f32 to vector<16x128xf32>
    %114 = arith.addf %113, %112 : vector<16x128xf32>
    %115 = arith.mulf %104, %114 : vector<16x128xf32>
    %116 = arith.truncf %115 : vector<16x128xf32> to vector<16x128xbf16>
    %cst_35 = arith.constant dense<0.000000e+00> : vector<16x128xf32>
    %117 = tpu.matmul %116, %69, %cst_35 {dimension_numbers = #tpu.dot_dimension_numbers<[1], [0], [0], [1], [0, 0, 1, 1], [], []>} : vector<16x128xbf16>, vector<128x128xbf16>, vector<16x128xf32> -> vector<16x128xf32>
    %118 = vector.broadcast %76 : vector<1x128xf32> to vector<16x128xf32>
    %119 = arith.addf %117, %118 : vector<16x128xf32>
    %120 = arith.addf %63, %119 : vector<16x128xf32>
    %c2_i32 = arith.constant 2 : i32
    %121 = vector.extract_strided_slice %0 {offsets = [1, 0], sizes = [1, 128], strides = [1, 1]} : vector<8x128xf32> to vector<1x128xf32>
    %122 = vector.extract_strided_slice %0 {offsets = [2, 0], sizes = [1, 128], strides = [1, 1]} : vector<8x128xf32> to vector<1x128xf32>
    %123 = vector.extract_strided_slice %0 {offsets = [3, 0], sizes = [1, 128], strides = [1, 1]} : vector<8x128xf32> to vector<1x128xf32>
    %124 = vector.extract_strided_slice %0 {offsets = [4, 0], sizes = [1, 1], strides = [1, 1]} : vector<8x128xf32> to vector<1x1xf32>
    %cst_36 = arith.constant dense<0.000000e+00> : vector<16xf32>
    %125 = vector.multi_reduction <add>, %120, %cst_36 [1] : vector<16x128xf32> to vector<16xf32>
    %126 = vector.shape_cast %125 : vector<16xf32> to vector<16x1xf32>
    %cst_37 = arith.constant 3.125000e-02 : f32
    %127 = vector.broadcast %cst_37 : f32 to vector<16x1xf32>
    %128 = arith.mulf %126, %127 : vector<16x1xf32>
    %129 = arith.mulf %120, %120 : vector<16x128xf32>
    %cst_38 = arith.constant dense<0.000000e+00> : vector<16xf32>
    %130 = vector.multi_reduction <add>, %129, %cst_38 [1] : vector<16x128xf32> to vector<16xf32>
    %131 = vector.shape_cast %130 : vector<16xf32> to vector<16x1xf32>
    %cst_39 = arith.constant 3.125000e-02 : f32
    %132 = vector.broadcast %cst_39 : f32 to vector<16x1xf32>
    %133 = arith.mulf %131, %132 : vector<16x1xf32>
    %134 = arith.mulf %128, %128 : vector<16x1xf32>
    %135 = arith.subf %133, %134 : vector<16x1xf32>
    %136 = vector.broadcast %128 : vector<16x1xf32> to vector<16x128xf32>
    %137 = arith.subf %120, %136 : vector<16x128xf32>
    %cst_40 = arith.constant 9.99999974E-6 : f32
    %138 = vector.broadcast %cst_40 : f32 to vector<16x1xf32>
    %139 = arith.addf %135, %138 : vector<16x1xf32>
    %140 = math.rsqrt %139 : vector<16x1xf32>
    %141 = vector.broadcast %140 : vector<16x1xf32> to vector<16x128xf32>
    %142 = arith.mulf %137, %141 : vector<16x128xf32>
    %143 = vector.broadcast %121 : vector<1x128xf32> to vector<16x128xf32>
    %144 = arith.mulf %142, %143 : vector<16x128xf32>
    %145 = vector.broadcast %122 : vector<1x128xf32> to vector<16x128xf32>
    %146 = arith.addf %144, %145 : vector<16x128xf32>
    %cst_41 = arith.constant dense<0.000000e+00> : vector<1x16xf32>
    %147 = tpu.matmul %123, %146, %cst_41 {dimension_numbers = #tpu.dot_dimension_numbers<[1], [1], [0], [0], [0, 0, 1, 0], [], []>} : vector<1x128xf32>, vector<16x128xf32>, vector<1x16xf32> -> vector<1x16xf32>
    %148 = vector.broadcast %124 : vector<1x1xf32> to vector<1x16xf32>
    %149 = arith.addf %147, %148 : vector<1x16xf32>
    %150 = vector.shape_cast %149 : vector<1x16xf32> to vector<1x16xf32>
    %151 = vector.broadcast %150 : vector<1x16xf32> to vector<8x16xf32>
    %c0_42 = arith.constant 0 : index
    %c0_43 = arith.constant 0 : index
    %152 = vector.load %arg7[%c0_42, %c0_43] : memref<8x16xf32, #tpu.memory_space<vmem>>, vector<8x16xf32>
    tpu.vector_store %arg7[%c0_42, %c0_43], %151 {strides = array<i32>} : memref<8x16xf32, #tpu.memory_space<vmem>>, vector<8x16xf32>,
    return
  }
  func.func @transform_0(%arg0: i32) -> (i32, i32) {
    %c0_i32 = arith.constant 0 : i32
    %c0_i32_0 = arith.constant 0 : i32
    return %arg0, %c0_i32 : i32, i32
  }
  func.func @transform_1(%arg0: i32) -> (i32, i32) {
    %c0_i32 = arith.constant 0 : i32
    %c0_i32_0 = arith.constant 0 : i32
    %c0_i32_1 = arith.constant 0 : i32
    return %c0_i32, %c0_i32_0 : i32, i32
  }
  func.func @transform_2(%arg0: i32) -> (i32, i32) {
    %c0_i32 = arith.constant 0 : i32
    %c0_i32_0 = arith.constant 0 : i32
    %c0_i32_1 = arith.constant 0 : i32
    return %c0_i32, %c0_i32_0 : i32, i32
  }
  func.func @transform_3(%arg0: i32) -> (i32, i32, i32) {
    %c0_i32 = arith.constant 0 : i32
    %c0_i32_0 = arith.constant 0 : i32
    %c0_i32_1 = arith.constant 0 : i32
    %c0_i32_2 = arith.constant 0 : i32
    return %c0_i32, %c0_i32_0, %c0_i32_1 : i32, i32, i32
  }
  func.func @transform_4(%arg0: i32) -> (i32, i32, i32) {
    %c0_i32 = arith.constant 0 : i32
    %c0_i32_0 = arith.constant 0 : i32
    %c0_i32_1 = arith.constant 0 : i32
    %c0_i32_2 = arith.constant 0 : i32
    return %c0_i32, %c0_i32_0, %c0_i32_1 : i32, i32, i32
  }
  func.func @transform_5(%arg0: i32) -> (i32, i32, i32) {
    %c0_i32 = arith.constant 0 : i32
    %c0_i32_0 = arith.constant 0 : i32
    %c0_i32_1 = arith.constant 0 : i32
    %c0_i32_2 = arith.constant 0 : i32
    return %c0_i32, %c0_i32_0, %c0_i32_1 : i32, i32, i32
  }
  func.func @transform_6(%arg0: i32) -> (i32, i32) {
    %c0_i32 = arith.constant 0 : i32
    %c0_i32_0 = arith.constant 0 : i32
    return %arg0, %c0_i32 : i32, i32
  }
}

</mosaic_0001>

<bundles_post_ra>
// kernel: resmlp_forward.1
= control target key start
LH: loop header
LB: loop body
LE: loop exit
PB: predicated region body
PF: predicated region fallthrough
CT: control target
= control target key end

     0   :  { %s1139_s1 = inlined_call_operand.vmem [shape: bf16[128,128], index: 1, kind: input, shape index: {}]   ;;  %s1140_s0 = inlined_call_operand.vmem [shape: bf16[16,128], index: 0, kind: input, shape index: {}]   ;;  %s1141_s2 = inlined_call_operand.vmem [shape: f32[8,128], index: 2, kind: input, shape index: {}]   ;;  %s1142_s3 = inlined_call_operand.vmem [shape: bf16[2,128,128], index: 3, kind: input, shape index: {}]   ;;  %s1143_s5 = inlined_call_operand.vmem [shape: f32[2,8,128], index: 5, kind: input, shape index: {}]   ;;  %s1144_s4 = inlined_call_operand.vmem [shape: bf16[2,128,128], index: 4, kind: input, shape index: {}]   ;;  %s1145_s6 = inlined_call_operand.vmem [shape: f32[8,16], index: 6, kind: output, shape index: {}]  }
   0x1   :  { %v866_v0 = vld [vmem:[%s1139_s1 + $0x38] sm:$0xff]  ;;  %v865_v1 = vld [vmem:[%s1139_s1 + $0x30] sm:$0xff]  ;;  %v864_v2 = vld [vmem:[%s1139_s1 + $0x28] sm:$0xff] }
   0x2   :  { %97 = vmatpush.bf16.msra.mxu0 %v866_v0  ;;  %v863_v3 = vld [vmem:[%s1139_s1 + $0x20] sm:$0xff]  ;;  %v862_v4 = vld [vmem:[%s1139_s1 + $0x18] sm:$0xff]  ;;  %v861_v5 = vld [vmem:[%s1139_s1 + $0x10] sm:$0xff] }
   0x3   :  { %v860_v6 = vld [vmem:[%s1139_s1 + $0x8] sm:$0xff]  ;;  %v859_v7 = vld [vmem:[%s1139_s1] sm:$0xff]  ;;  %v874_v17 = vld [vmem:[%s1142_s3 + $0x38] sm:$0xff] }
   0x4   :  { %v858_v8 = vld [vmem:[%s1140_s0] sm:$0xff]  ;;  %244 = vmatpush.bf16.msra.mxu1 %v874_v17  ;;  %v873_v18 = vld [vmem:[%s1142_s3 + $0x30] sm:$0xff]  ;;  %v872_v19 = vld [vmem:[%s1142_s3 + $0x28] sm:$0xff] }
   0x5   :  { %v987_v9 = vld [vmem:[%s1141_s2] sm:$0xff]  ;;  %v870_v21 = vld [vmem:[%s1142_s3 + $0x18] sm:$0xff]  ;;  %v869_v22 = vld [vmem:[%s1142_s3 + $0x10] sm:$0xff] }
   0x6   :  { %98 = vmatpush.bf16.msra.mxu0 %v865_v1  ;;  %v42_v10 = vperm.slane %v987_v9, 0  ;;  %v871_v20 = vld [vmem:[%s1142_s3 + $0x20] sm:$0xff]  ;;  %v868_v24 = vld [vmem:[%s1142_s3 + $0x8] sm:$0xff]  ;;  %v882_v1 = vld [vmem:[%s1144_s4 + $0x38] sm:$0xff] }
   0x7   :  { %v867_v29 = vld [vmem:[%s1142_s3] sm:$0xff]  ;;  %326 = vmatpush.bf16.msra.mxu2 %v882_v1 }
   0x8   :  { %245 = vmatpush.bf16.msra.mxu1 %v873_v18  ;;  %v1027_v49 = vld [vmem:[%s1143_s5] sm:$0xff] }
   0x9   :  { %v188_v54 = vperm.slane %v1027_v49, 0  ;;  %v191_v60 = vperm.slane %v1027_v49, 1 }
   0xa   :  { %99 = vmatpush.bf16.msra.mxu0 %v864_v2  ;;  %v881_v2 = vld [vmem:[%s1144_s4 + $0x30] sm:$0xff] }
   0xb   :  { %327 = vmatpush.bf16.msra.mxu2 %v881_v2 }
   0xc   :  { %246 = vmatpush.bf16.msra.mxu1 %v872_v19 }
   0xe   :  { %100 = vmatpush.bf16.msra.mxu0 %v863_v3  ;;  %v880_v3 = vld [vmem:[%s1144_s4 + $0x28] sm:$0xff] }
   0xf   :  { %328 = vmatpush.bf16.msra.mxu2 %v880_v3 }
  0x10   :  { %247 = vmatpush.bf16.msra.mxu1 %v871_v20 }
  0x12   :  { %101 = vmatpush.bf16.msra.mxu0 %v862_v4  ;;  %v879_v4 = vld [vmem:[%s1144_s4 + $0x20] sm:$0xff] }
  0x13   :  { %329 = vmatpush.bf16.msra.mxu2 %v879_v4 }
  0x14   :  { %248 = vmatpush.bf16.msra.mxu1 %v870_v21 }
  0x16   :  { %102 = vmatpush.bf16.msra.mxu0 %v861_v5  ;;  %v878_v5 = vld [vmem:[%s1144_s4 + $0x18] sm:$0xff] }
  0x17   :  { %330 = vmatpush.bf16.msra.mxu2 %v878_v5 }
  0x18   :  { %249 = vmatpush.bf16.msra.mxu1 %v869_v22 }
  0x1a   :  { %103 = vmatpush.bf16.msra.mxu0 %v860_v6  ;;  %v877_v6 = vld [vmem:[%s1144_s4 + $0x10] sm:$0xff] }
  0x1b   :  { %331 = vmatpush.bf16.msra.mxu2 %v877_v6 }
  0x1c   :  { %250 = vmatpush.bf16.msra.mxu1 %v868_v24 }
  0x1e   :  { %104 = vmatpush.bf16.msra.mxu0 %v859_v7  ;;  %v876_v7 = vld [vmem:[%s1144_s4 + $0x8] sm:$0xff] }
  0x1f   :  { %332 = vmatpush.bf16.msra.mxu2 %v876_v7 }
  0x20   :  { %251 = vmatpush.bf16.msra.mxu1 %v867_v29 }
  0x21   :  { %105 = vmatmul.bf16.vlgmr.msra.gmra.mxu0 %v858_v8  ;;  %v875_v8 = vld [vmem:[%s1144_s4] sm:$0xff] }
  0x23   :  { %333 = vmatpush.bf16.msra.mxu2 %v875_v8 }
  0x9e   :  { %v106_v11 = vpop.f32.mrf.mxu0 }
  0x9f   :  { %v990_v12 = vadd.f32 %v106_v11, %v42_v10 }
  0xa1   :  { %144 = vadd.xlane.f32.xlu0 %v990_v12  ;;  %v150_v13 = vmul.f32 %v990_v12, %v990_v12 }
  0xa3   :  { %152 = vadd.xlane.f32.xlu1 %v150_v13 }
  0xa6   :  { %v108_v14 = vpop.f32.mrf.mxu0 }
  0xa7   :  { %v995_v15 = vadd.f32 %v108_v14, %v42_v10  ;;  %v195_v10 = vperm.slane %v1027_v49, 2 }
  0xa9   :  { %146 = vadd.xlane.f32.xlu0 %v995_v15  ;;  %v151_v16 = vmul.f32 %v995_v15, %v995_v15 }
  0xab   :  { %154 = vadd.xlane.f32.xlu1 %v151_v16 }
 0x114   :  { %v145_v23 = vpop.xlane.xlu0 %144 }
 0x115   :  { %v148_v25 = vmul.f32 0.03125, %v145_v23 }
 0x116   :  { %v153_v26 = vpop.xlane.xlu1 %152 }
 0x117   :  { %v158_v27 = vmul.f32 %v148_v25, %v148_v25  ;;  %v156_v28 = vmul.f32 0.03125, %v153_v26  ;;  %v162_v51 = vsub.f32 %v990_v12, %v148_v25 }
 0x119   :  { %v160_v30 = vsub.f32 %v156_v28, %v158_v27 }
 0x11b   :  { %v164_v31 = vadd.f32 1e-05, %v160_v30 }
 0x11c   :  { %v147_v32 = vpop.xlane.xlu0 %146 }
 0x11d   :  { %901 = vrsqrt.f32 %v164_v31  ;;  %v149_v33 = vmul.f32 0.03125, %v147_v32  ;;  %vm172_vm1 = vweird.f32 %v164_v31 }
 0x11e   :  { %v155_v34 = vpop.xlane.xlu1 %154 }
 0x11f   :  { %v159_v35 = vmul.f32 %v149_v33, %v149_v33  ;;  %v157_v36 = vmul.f32 0.03125, %v155_v34  ;;  %v163_v56 = vsub.f32 %v995_v15, %v149_v33 }
 0x121   :  { %v161_v37 = vsub.f32 %v157_v36, %v159_v35  ;;  %v277_v36 = vperm.slane %v1027_v49, 3 }
 0x123   :  { %v902_v38 = vpop.eup %901  ;;  %v165_v39 = vadd.f32 1e-05, %v161_v37 }
 0x124   :  { %v167_v40 = vmul.f32 %v902_v38, %v164_v31  ;;  %vm173_vm0 = vweird.f32 %v902_v38 }
 0x125   :  { %903 = vrsqrt.f32 %v165_v39  ;;  %vm174_vm2 = vmor %vm172_vm1, %vm173_vm0  ;;  %vm182_vm4 = vweird.f32 %v165_v39 }
 0x126   :  { %v168_v41 = vmul.f32 %v902_v38, %v167_v40 }
 0x128   :  { %v169_v42 = vmul.f32 0.5, %v168_v41 }
 0x12a   :  { %v170_v43 = vsub.f32 1.5, %v169_v42 }
 0x12b   :  { %v904_v44 = vpop.eup %903 }
 0x12c   :  { %v171_v45 = vmul.f32 %v902_v38, %v170_v43  ;;  %v177_v46 = vmul.f32 %v904_v44, %v165_v39  ;;  %vm183_vm3 = vweird.f32 %v904_v44 }
 0x12d   :  { %vm184_vm5 = vmor %vm182_vm4, %vm183_vm3 }
 0x12e   :  { %v178_v47 = vmul.f32 %v904_v44, %v177_v46  ;;  %v175_v50 = vsel %vm174_vm2, %v902_v38, %v171_v45  ;;  %v889_v45 = vld [vmem:[%s1142_s3 + $0x70] sm:$0xff]  ;;  %v887_v46 = vld [vmem:[%s1142_s3 + $0x60] sm:$0xff]  ;;  %vm655_vm2 = vcmask 130048  }
 0x12f   :  { %v186_v53 = vmul.f32 %v175_v50, %v162_v51  ;;  %v884_v50 = vld [vmem:[%s1142_s3 + $0x48] sm:$0xff] }
 0x130   :  { %v179_v48 = vmul.f32 0.5, %v178_v47  ;;  %v886_v47 = vld [vmem:[%s1142_s3 + $0x58] sm:$0xff] }
 0x131   :  { %v189_v59 = vmul.f32 %v188_v54, %v186_v53 }
 0x132   :  { %v180_v52 = vsub.f32 1.5, %v179_v48  ;;  %v885_v48 = vld [vmem:[%s1142_s3 + $0x50] sm:$0xff] }
 0x133   :  { %v192_v62 = vadd.f32 %v191_v60, %v189_v59 }
 0x134   :  { %v181_v55 = vmul.f32 %v904_v44, %v180_v52 }
 0x136   :  { %v185_v57 = vsel %vm184_vm5, %v904_v44, %v181_v55  ;;  %v883_v55 = vld [vmem:[%s1142_s3 + $0x40] sm:$0xff] }
 0x137   :  { %v187_v58 = vmul.f32 %v185_v57, %v163_v56 }
 0x139   :  { %v190_v61 = vmul.f32 %v188_v54, %v187_v58 }
 0x13b   :  { %v193_v63 = vadd.f32 %v191_v60, %v190_v61 }
 0x13d   :  { %v194_v0 = vpack.c.bf16 %v193_v63, %v192_v62 }
 0x13f   :  { %252 = vmatmul.bf16.vlgmr.msra.gmra.mxu1 %v194_v0 }
 0x1bc   :  { %v253_v11 = vpop.f32.mrf.mxu1 }
 0x1bd   :  { %v254_v13 = vadd.f32 %v253_v11, %v195_v10 }
 0x1bf   :  { %v260_v14 = vmul.f32 %v254_v13, %v254_v13  ;;  %v258_v30 = vmul.f32 0.5, %v254_v13 }
 0x1c1   :  { %v262_v16 = vmul.f32 %v260_v14, %v254_v13 }
 0x1c3   :  { %v264_v17 = vmul.f32 0.044715, %v262_v16 }
 0x1c4   :  { %v255_v18 = vpop.f32.mrf.mxu1 }
 0x1c5   :  { %v256_v19 = vadd.f32 %v255_v18, %v195_v10  ;;  %v266_v20 = vadd.f32 %v264_v17, %v254_v13  ;;  %v1098_v13 = vld [vmem:[%s1143_s5 + $0x8] sm:$0xff] }
 0x1c7   :  { %v261_v21 = vmul.f32 %v256_v19, %v256_v19  ;;  %v268_v23 = vmul.f32 0.7978846, %v266_v20  ;;  %v259_v31 = vmul.f32 0.5, %v256_v19 }
 0x1c9   :  { %v263_v22 = vmul.f32 %v261_v21, %v256_v19  ;;  %905 = vtanh.f32 %v268_v23 }
 0x1cb   :  { %v265_v24 = vmul.f32 0.044715, %v263_v22 }
 0x1cd   :  { %v267_v25 = vadd.f32 %v265_v24, %v256_v19  ;;  %v422_v19 = vperm.slane %v1098_v13, 0 }
 0x1cf   :  { %v269_v26 = vmul.f32 0.7978846, %v267_v25  ;;  %v906_v27 = vpop.eup %905  ;;  %v425_v25 = vperm.slane %v1098_v13, 1 }
 0x1d0   :  { %v272_v28 = vadd.f32 1.0, %v906_v27 }
 0x1d1   :  { %907 = vtanh.f32 %v269_v26 }
 0x1d2   :  { %v274_v33 = vmul.f32 %v272_v28, %v258_v30  ;;  %v898_v30 = vld [vmem:[%s1144_s4 + $0x78] sm:$0xff] }
 0x1d3   :  { %560 = vmatpush.bf16.msrb.mxu0 %v898_v30 }
 0x1d7   :  { %v908_v29 = vpop.eup %907 }
 0x1d8   :  { %v273_v32 = vadd.f32 1.0, %v908_v29 }
 0x1da   :  { %v275_v34 = vmul.f32 %v273_v32, %v259_v31  ;;  %v897_v31 = vld [vmem:[%s1144_s4 + $0x70] sm:$0xff]  ;;  %v896_v32 = vld [vmem:[%s1144_s4 + $0x68] sm:$0xff] }
 0x1db   :  { %561 = vmatpush.bf16.msrb.mxu0 %v897_v31 }
 0x1dc   :  { %v276_v35 = vpack.c.bf16 %v275_v34, %v274_v33  ;;  %v895_v33 = vld [vmem:[%s1144_s4 + $0x60] sm:$0xff]  ;;  %v894_v34 = vld [vmem:[%s1144_s4 + $0x58] sm:$0xff] }
 0x1de   :  { %334 = vmatmul.bf16.vlgmr.msra.gmra.mxu2 %v276_v35  ;;  %v893_v35 = vld [vmem:[%s1144_s4 + $0x50] sm:$0xff] }
 0x1df   :  { %562 = vmatpush.bf16.msrb.mxu0 %v896_v32 }
 0x1e3   :  { %563 = vmatpush.bf16.msrb.mxu0 %v895_v33  ;;  %v620_v33 = vperm.slane %v987_v9, 1 }
 0x1e7   :  { %564 = vmatpush.bf16.msrb.mxu0 %v894_v34 }
 0x1eb   :  { %565 = vmatpush.bf16.msrb.mxu0 %v893_v35 }
 0x261   :  { %v335_v37 = vpop.f32.mrf.mxu2 }
 0x262   :  { %v336_v38 = vadd.f32 %v335_v37, %v277_v36  ;;  %v891_v37 = vld [vmem:[%s1144_s4 + $0x40] sm:$0xff] }
 0x264   :  { %v1060_v39 = vadd.f32 %v336_v38, %v990_v12  ;;  %v890_v12 = vld [vmem:[%s1142_s3 + $0x78] sm:$0xff]  ;;  %v429_v38 = vperm.slane %v1098_v13, 2 }
 0x265   :  { %478 = vmatpush.bf16.msra.mxu3 %v890_v12 }
 0x266   :  { %378 = vadd.xlane.f32.xlu2 %v1060_v39  ;;  %v384_v40 = vmul.f32 %v1060_v39, %v1060_v39 }
 0x268   :  { %386 = vadd.xlane.f32.xlu0 %v384_v40 }
 0x269   :  { %v337_v41 = vpop.f32.mrf.mxu2  ;;  %479 = vmatpush.bf16.msra.mxu3 %v889_v45 }
 0x26a   :  { %v338_v42 = vadd.f32 %v337_v41, %v277_v36  ;;  %v892_v36 = vld [vmem:[%s1144_s4 + $0x48] sm:$0xff] }
 0x26b   :  { %566 = vmatpush.bf16.msrb.mxu0 %v892_v36 }
 0x26c   :  { %v1066_v43 = vadd.f32 %v338_v42, %v995_v15  ;;  %v888_v15 = vld [vmem:[%s1142_s3 + $0x68] sm:$0xff] }
 0x26d   :  { %480 = vmatpush.bf16.msra.mxu3 %v888_v15 }
 0x26e   :  { %380 = vadd.xlane.f32.xlu2 %v1066_v43  ;;  %v385_v44 = vmul.f32 %v1066_v43, %v1066_v43 }
 0x26f   :  { %567 = vmatpush.bf16.msrb.mxu0 %v891_v37  ;;  %v623_v37 = vperm.slane %v987_v9, 2 }
 0x270   :  { %388 = vadd.xlane.f32.xlu1 %v385_v44 }
 0x271   :  { %481 = vmatpush.bf16.msra.mxu3 %v887_v46 }
 0x275   :  { %482 = vmatpush.bf16.msra.mxu3 %v886_v47 }
 0x279   :  { %483 = vmatpush.bf16.msra.mxu3 %v885_v48 }
 0x27d   :  { %484 = vmatpush.bf16.msra.mxu3 %v884_v50 }
 0x281   :  { %485 = vmatpush.bf16.msra.mxu3 %v883_v55 }
 0x2d9   :  { %v379_v49 = vpop.xlane.xlu2 %378 }
 0x2da   :  { %v382_v51 = vmul.f32 0.03125, %v379_v49 }
 0x2db   :  { %v387_v52 = vpop.xlane.xlu0 %386 }
 0x2dc   :  { %v392_v53 = vmul.f32 %v382_v51, %v382_v51  ;;  %v390_v54 = vmul.f32 0.03125, %v387_v52  ;;  %v396_v16 = vsub.f32 %v1060_v39, %v382_v51 }
 0x2de   :  { %v394_v56 = vsub.f32 %v390_v54, %v392_v53 }
 0x2e0   :  { %v398_v57 = vadd.f32 1e-05, %v394_v56 }
 0x2e1   :  { %v381_v58 = vpop.xlane.xlu2 %380 }
 0x2e2   :  { %909 = vrsqrt.f32 %v398_v57  ;;  %v383_v59 = vmul.f32 0.03125, %v381_v58  ;;  %vm406_vm7 = vweird.f32 %v398_v57 }
 0x2e3   :  { %v389_v60 = vpop.xlane.xlu1 %388 }
 0x2e4   :  { %v393_v61 = vmul.f32 %v383_v59, %v383_v59  ;;  %v391_v62 = vmul.f32 0.03125, %v389_v60  ;;  %v397_v21 = vsub.f32 %v1066_v43, %v383_v59 }
 0x2e6   :  { %v395_v63 = vsub.f32 %v391_v62, %v393_v61  ;;  %v511_v62 = vperm.slane %v1098_v13, 3 }
 0x2e8   :  { %v910_v0 = vpop.eup %909  ;;  %v399_v1 = vadd.f32 1e-05, %v395_v63 }
 0x2e9   :  { %v401_v2 = vmul.f32 %v910_v0, %v398_v57  ;;  %vm407_vm6 = vweird.f32 %v910_v0 }
 0x2ea   :  { %911 = vrsqrt.f32 %v399_v1  ;;  %vm408_vm8 = vmor %vm406_vm7, %vm407_vm6  ;;  %vm416_vm10 = vweird.f32 %v399_v1 }
 0x2eb   :  { %v402_v3 = vmul.f32 %v910_v0, %v401_v2 }
 0x2ed   :  { %v403_v4 = vmul.f32 0.5, %v402_v3 }
 0x2ef   :  { %v404_v5 = vsub.f32 1.5, %v403_v4 }
 0x2f0   :  { %v912_v6 = vpop.eup %911 }
 0x2f1   :  { %v405_v7 = vmul.f32 %v910_v0, %v404_v5  ;;  %v411_v8 = vmul.f32 %v912_v6, %v399_v1  ;;  %vm417_vm9 = vweird.f32 %v912_v6 }
 0x2f2   :  { %vm418_vm11 = vmor %vm416_vm10, %vm417_vm9 }
 0x2f3   :  { %v412_v10 = vmul.f32 %v912_v6, %v411_v8  ;;  %v409_v14 = vsel %vm408_vm8, %v910_v0, %v405_v7 }
 0x2f4   :  { %v420_v18 = vmul.f32 %v409_v14, %v396_v16 }
 0x2f5   :  { %v413_v11 = vmul.f32 0.5, %v412_v10 }
 0x2f6   :  { %v423_v24 = vmul.f32 %v422_v19, %v420_v18 }
 0x2f7   :  { %v414_v17 = vsub.f32 1.5, %v413_v11 }
 0x2f8   :  { %v426_v27 = vadd.f32 %v425_v25, %v423_v24 }
 0x2f9   :  { %v415_v20 = vmul.f32 %v912_v6, %v414_v17 }
 0x2fb   :  { %v419_v22 = vsel %vm418_vm11, %v912_v6, %v415_v20 }
 0x2fc   :  { %v421_v23 = vmul.f32 %v419_v22, %v397_v21 }
 0x2fe   :  { %v424_v26 = vmul.f32 %v422_v19, %v421_v23 }
 0x300   :  { %v427_v28 = vadd.f32 %v425_v25, %v424_v26 }
 0x302   :  { %v428_v29 = vpack.c.bf16 %v427_v28, %v426_v27 }
 0x304   :  { %486 = vmatmul.bf16.vlgmr.msra.gmra.mxu3 %v428_v29 }
 0x387   :  { %v487_v40 = vpop.f32.mrf.mxu3 }
 0x388   :  { %v488_v41 = vadd.f32 %v487_v40, %v429_v38 }
 0x38a   :  { %v494_v42 = vmul.f32 %v488_v41, %v488_v41  ;;  %v492_v56 = vmul.f32 0.5, %v488_v41 }
 0x38c   :  { %v496_v44 = vmul.f32 %v494_v42, %v488_v41 }
 0x38e   :  { %v498_v12 = vmul.f32 0.044715, %v496_v44 }
 0x38f   :  { %v489_v45 = vpop.f32.mrf.mxu3 }
 0x390   :  { %v500_v15 = vadd.f32 %v498_v12, %v488_v41  ;;  %v490_v46 = vadd.f32 %v489_v45, %v429_v38 }
 0x392   :  { %v495_v47 = vmul.f32 %v490_v46, %v490_v46  ;;  %v502_v48 = vmul.f32 0.7978846, %v500_v15  ;;  %v493_v57 = vmul.f32 0.5, %v490_v46 }
 0x394   :  { %v497_v49 = vmul.f32 %v495_v47, %v490_v46  ;;  %913 = vtanh.f32 %v502_v48  ;;  %v630_v47 = vrot.slane %v987_v9, 3 }
 0x396   :  { %v499_v50 = vmul.f32 0.044715, %v497_v49 }
 0x398   :  { %v501_v51 = vadd.f32 %v499_v50, %v490_v46 }
 0x39a   :  { %v503_v52 = vmul.f32 0.7978846, %v501_v51  ;;  %v914_v53 = vpop.eup %913 }
 0x39b   :  { %v506_v54 = vadd.f32 1.0, %v914_v53 }
 0x39c   :  { %915 = vtanh.f32 %v503_v52 }
 0x39d   :  { %v508_v59 = vmul.f32 %v506_v54, %v492_v56 }
 0x3a2   :  { %v916_v55 = vpop.eup %915 }
 0x3a3   :  { %v507_v58 = vadd.f32 1.0, %v916_v55 }
 0x3a5   :  { %v509_v60 = vmul.f32 %v507_v58, %v493_v57 }
 0x3a7   :  { %v510_v61 = vpack.c.bf16 %v509_v60, %v508_v59 }
 0x3a9   :  { %568 = vmatmul.bf16.vlgmr.msrb.gmra.mxu0 %v510_v61 }
 0x426   :  { %v569_v63 = vpop.f32.mrf.mxu0 }
 0x427   :  { %v570_v0 = vadd.f32 %v569_v63, %v511_v62 }
 0x429   :  { %v574_v1 = vadd.f32 %v570_v0, %v1060_v39 }
 0x42b   :  { %576 = vadd.xlane.f32.xlu1 %v574_v1  ;;  %v582_v6 = vmul.f32 %v574_v1, %v574_v1 }
 0x42e   :  { %v571_v2 = vpop.f32.mrf.mxu0 }
 0x42f   :  { %v572_v3 = vadd.f32 %v571_v2, %v511_v62 }
 0x431   :  { %v575_v4 = vadd.f32 %v572_v3, %v1066_v43  ;;  %v921_v43 = vmov 0  }
 0x432   :  { %900 = vset.pattern.permute.xlu0 %v921_v43 }
 0x433   :  { %578 = vadd.xlane.f32.xlu2 %v575_v4  ;;  %v583_v5 = vmul.f32 %v575_v4, %v575_v4 }
 0x435   :  { %586 = vadd.xlane.f32.xlu0 %v583_v5 }
 0x43b   :  { %584 = vadd.xlane.f32.xlu2 %v582_v6 }
 0x449   :  { %628 = vperm.xlu0 %900, %v987_v9  }
 0x49e   :  { %v577_v10 = vpop.xlane.xlu1 %576 }
 0x49f   :  { %v580_v16 = vmul.f32 0.03125, %v577_v10 }
 0x4a1   :  { %v590_v19 = vmul.f32 %v580_v16, %v580_v16  ;;  %v594_v42 = vsub.f32 %v574_v1, %v580_v16 }
 0x4a6   :  { %v579_v7 = vpop.xlane.xlu2 %578 }
 0x4a7   :  { %v581_v8 = vmul.f32 0.03125, %v579_v7 }
 0x4a8   :  { %v587_v11 = vpop.xlane.xlu0 %586 }
 0x4a9   :  { %v591_v14 = vmul.f32 %v581_v8, %v581_v8  ;;  %v589_v13 = vmul.f32 0.03125, %v587_v11  ;;  %v595_v32 = vsub.f32 %v575_v4, %v581_v8 }
 0x4ab   :  { %v593_v17 = vsub.f32 %v589_v13, %v591_v14 }
 0x4ad   :  { %v597_v18 = vadd.f32 1e-05, %v593_v17 }
 0x4ae   :  { %v585_v39 = vpop.xlane.xlu2 %584 }
 0x4af   :  { %917 = vrsqrt.f32 %v597_v18  ;;  %v588_v20 = vmul.f32 0.03125, %v585_v39  ;;  %vm614_vm13 = vweird.f32 %v597_v18 }
 0x4b1   :  { %v592_v21 = vsub.f32 %v588_v20, %v590_v19 }
 0x4b3   :  { %v596_v22 = vadd.f32 1e-05, %v592_v21 }
 0x4b5   :  { %v918_v23 = vpop.eup %917  ;;  %919 = vrsqrt.f32 %v596_v22  ;;  %vm604_vm0 = vweird.f32 %v596_v22 }
 0x4b6   :  { %v609_v24 = vmul.f32 %v918_v23, %v597_v18  ;;  %vm615_vm12 = vweird.f32 %v918_v23 }
 0x4b7   :  { %vm616_vm14 = vmor %vm614_vm13, %vm615_vm12 }
 0x4b8   :  { %v610_v25 = vmul.f32 %v918_v23, %v609_v24 }
 0x4ba   :  { %v611_v26 = vmul.f32 0.5, %v610_v25 }
 0x4bb   :  { %v920_v27 = vpop.eup %919  ;;  %v629_v48 = vpop.permute.xlu0 %628 }
 0x4bc   :  { %v612_v28 = vsub.f32 1.5, %v611_v26  ;;  %v599_v29 = vmul.f32 %v920_v27, %v596_v22  ;;  %vm605_vm15 = vweird.f32 %v920_v27  ;;  %v632_v49 = vrot.slane %v629_v48, 4 }
 0x4bd   :  { %vm606_vm1 = vmor %vm604_vm0, %vm605_vm15 }
 0x4be   :  { %v600_v30 = vmul.f32 %v920_v27, %v599_v29  ;;  %v613_v31 = vmul.f32 %v918_v23, %v612_v28 }
 0x4c0   :  { %v601_v34 = vmul.f32 0.5, %v600_v30  ;;  %v617_v35 = vsel %vm616_vm14, %v918_v23, %v613_v31 }
 0x4c1   :  { %v619_v36 = vmul.f32 %v617_v35, %v595_v32 }
 0x4c2   :  { %v602_v38 = vsub.f32 1.5, %v601_v34 }
 0x4c3   :  { %v622_v40 = vmul.f32 %v620_v33, %v619_v36 }
 0x4c4   :  { %v603_v41 = vmul.f32 %v920_v27, %v602_v38 }
 0x4c5   :  { %v625_v44 = vadd.f32 %v623_v37, %v622_v40 }
 0x4c6   :  { %v607_v12 = vsel %vm606_vm1, %v920_v27, %v603_v41 }
 0x4c7   :  { %648 = vmatpush.xpose.msrb.mxu1 %v625_v44  ;;  %v618_v45 = vmul.f32 %v607_v12, %v594_v42 }
 0x4c9   :  { %v621_v15 = vmul.f32 %v620_v33, %v618_v45 }
 0x4cb   :  { %v624_v46 = vadd.f32 %v623_v37, %v621_v15 }
 0x4cd   :  { %649 = vmatpush.xpose.msrb.mxu1 %v624_v46 }
 0x4d0   :  { %650 = vmatmul.f32.vlgmr.msrb.gmra.mxu1 %v630_v47 }
 0x54d   :  { %v651_v50 = vpop.f32.mrf.mxu1 }
 0x54e   :  { %v652_v51 = vadd.f32 %v651_v50, %v632_v49 }
 0x550   :  { %v654_v52 = vperm.slane %v652_v51, 0 }
 0x552   :  { %656 = vst.msk [vmem:[%s1145_s6] sm:$0xff] %vm655_vm2, %v654_v52 }

</bundles_post_ra>
